<compile_context>
chip_gen: v5e
topology: v5e:2x2
jax: 0.10.0
libtpu: 0.0.40
codegen_flags: <defaults>
</compile_context>

<pallas_src>
import jax
import jax.numpy as jnp
from jax.experimental import pallas as pl
from jax.experimental.pallas import tpu as pltpu


def _locked_dropout_kernel(mask_ref, x_ref, o_ref):
    # mask_ref: (1, TILE_BH) pre-scaled mask in x.dtype; same block for every
    #           T tile -> mask is "locked" over the sequence axis.
    # x_ref / o_ref: (TILE_T, TILE_BH) tile of the (T, B*H) activation.
    o_ref[...] = x_ref[...] * mask_ref[...]   # (1, BH) row broadcasts over sublanes


def _round_up(a, b):
    return -(-a // b) * b


def locked_dropout(x, dropout, *, key, training=True):
    """LockedDropout forward. x: (T, B, H). Returns same shape/dtype."""
    if (not training) or (not dropout):
        return x

    T, B, H = x.shape
    BH = B * H
    dtype = x.dtype
    itemsize = jnp.dtype(dtype).itemsize

    # Lane-dense 2-D view: last dim B*H maps to lanes. (If BH is not a
    # multiple of 128 only the trailing vreg uses masked stores — acceptable;
    # padding in the wrapper would cost an extra materialized copy.)
    x2 = x.reshape(T, BH)

    # Pre-scaled mask in x.dtype: one Bernoulli(1-p) draw per (B, H) position.
    scale = 1.0 / (1.0 - float(dropout))
    keep = jax.random.bernoulli(key, p=1.0 - float(dropout), shape=(1, BH))
    mask = jnp.where(keep, jnp.asarray(scale, dtype), jnp.asarray(0, dtype))

    # ---- generation-aware VMEM budget -------------------------------------
    try:
        vmem_physical = int(pltpu.get_tpu_info().vmem_capacity_bytes)
    except Exception:
        vmem_physical = 64 * 1024 * 1024              # conservative (v7x)
    if vmem_physical >= 128 * 1024 * 1024:            # v5e / v6e
        vmem_limit = 64 * 1024 * 1024
        block_budget = 48 * 1024 * 1024
    else:                                             # v7x (64 MiB physical)
        vmem_limit = 32 * 1024 * 1024
        block_budget = 24 * 1024 * 1024
    # 2x in + 2x out double buffers dominate; keep each buffer <= ~8 MiB —
    # a few multi-MiB tiles already reach ~85% of HBM roofline.
    per_buffer_bytes = min(block_budget // 4, 8 * 1024 * 1024)

    # ---- dtype-aware sublane alignment ------------------------------------
    sublane = {1: 32, 2: 16}.get(itemsize, 8)
    LANE = 128

    # ---- BH (lane) tiling: only split when even the minimum-height tile
    # would not fit the per-buffer budget (guards huge B*H on v7x). ----------
    if sublane * BH * itemsize <= per_buffer_bytes:
        tile_bh = BH                                   # full extent (no split)
    else:
        cols_fit = (per_buffer_bytes // (sublane * itemsize)) // LANE * LANE
        tile_bh = max(LANE, cols_fit)                  # multiple of 128

    # ---- T (sublane) tiling: fit the budget, but never collapse to a single
    # block when T allows splitting — target >= 4 T tiles for pipelining and
    # megacore sharding. ------------------------------------------------------
    if T <= sublane:
        tile_t = T                                     # full-extent tiny axis
    else:
        rows_fit = max(sublane,
                       (per_buffer_bytes // (tile_bh * itemsize)) // sublane * sublane)
        rows_target = _round_up(max(1, -(-T // 4)), sublane)   # ~T/4, aligned
        tile_t = max(sublane, min(rows_fit, rows_target))
        tile_t = min(tile_t, _round_up(T, sublane))

    grid = (pl.cdiv(T, tile_t), pl.cdiv(BH, tile_bh))

    # NOTE: the mask block index never changes along T, so it is fetched once
    # per BH tile by the pipeline; an explicit pl.Buffered(1) would only save
    # one tiny (1, tile_bh) buffer, so it is omitted for simplicity.
    out2 = pl.pallas_call(
        _locked_dropout_kernel,
        grid=grid,
        out_shape=jax.ShapeDtypeStruct((T, BH), dtype),
        in_specs=[
            pl.BlockSpec((1, tile_bh), lambda t, c: (0, c)),        # locked mask
            pl.BlockSpec((tile_t, tile_bh), lambda t, c: (t, c)),   # x tile
        ],
        out_specs=pl.BlockSpec((tile_t, tile_bh), lambda t, c: (t, c)),
        compiler_params=pltpu.CompilerParams(
            dimension_semantics=("parallel", "parallel"),
            vmem_limit_bytes=vmem_limit,
        ),
    )(mask, x2)

    return out2.reshape(T, B, H)


if __name__ == "__main__":
    key = jax.random.PRNGKey(0)
    k_x, k_mask = jax.random.split(key)

    T, B, H = 8, 4, 32          # (seq_len, batch, hidden) small demo shapes
    dropout = 0.65              # dropouti from the language model

    x = jax.random.normal(k_x, (T, B, H), dtype=jnp.float32)

    y = locked_dropout(x, dropout, key=k_mask, training=True)
    y = jax.block_until_ready(y)

    # mask is "locked" across T: identical zero pattern at every time step
    zero_pattern = (y == 0.0)
    assert bool(jnp.all(zero_pattern == zero_pattern[0:1])), "mask not locked over T"

    # kept elements are scaled by 1/(1-p)
    scale = 1.0 / (1.0 - dropout)
    nz = ~zero_pattern
    ratio = jnp.where(nz, y / jnp.where(nz, x, 1.0), scale)
    assert bool(jnp.allclose(ratio, scale, rtol=1e-5, atol=1e-5)), "bad scaling"

    # eval / dropout==0 paths are identity
    y_eval = locked_dropout(x, dropout, key=k_mask, training=False)
    assert bool(jnp.array_equal(y_eval, x))
    y_zero = locked_dropout(x, 0.0, key=k_mask, training=True)
    assert bool(jnp.array_equal(y_zero, x))

    print("KERNEL_OK")
</pallas_src>

<mosaic_0001>
module attributes {stable_mosaic.version = 11 : i64} {
  func.func @_locked_dropout_kernel(%arg0: i32, %arg1: i32, %arg2: memref<1x128xf32, #tpu.memory_space<vmem>>, %arg3: memref<8x128xf32, #tpu.memory_space<vmem>>, %arg4: memref<8x128xf32, #tpu.memory_space<vmem>>) attributes {dimension_semantics = [#tpu.dimension_semantics<parallel>, #tpu.dimension_semantics<parallel>], iteration_bounds = array<i64: 1, 1>, scalar_prefetch = 0 : i64, scratch_operands = 0 : i64, tpu.core_type = #tpu.core_type<tc>, window_params = [{transform_indices = @transform_0, window_bounds = array<i64: 1, 128>}, {transform_indices = @transform_1, window_bounds = array<i64: 8, 128>}, {transform_indices = @transform_2, window_bounds = array<i64: 8, 128>}]} {
    %c0 = arith.constant 0 : index
    %c0_0 = arith.constant 0 : index
    %0 = vector.load %arg3[%c0, %c0_0] : memref<8x128xf32, #tpu.memory_space<vmem>>, vector<8x128xf32>
    %c0_1 = arith.constant 0 : index
    %c0_2 = arith.constant 0 : index
    %1 = vector.load %arg2[%c0_1, %c0_2] : memref<1x128xf32, #tpu.memory_space<vmem>>, vector<1x128xf32>
    %2 = vector.broadcast %1 : vector<1x128xf32> to vector<8x128xf32>
    %3 = arith.mulf %0, %2 : vector<8x128xf32>
    %c0_3 = arith.constant 0 : index
    %c0_4 = arith.constant 0 : index
    %4 = vector.load %arg4[%c0_3, %c0_4] : memref<8x128xf32, #tpu.memory_space<vmem>>, vector<8x128xf32>
    tpu.vector_store %arg4[%c0_3, %c0_4], %3 {strides = array<i32>} : memref<8x128xf32, #tpu.memory_space<vmem>>, vector<8x128xf32>,
    return
  }
  func.func @transform_0(%arg0: i32, %arg1: i32) -> (i32, i32) {
    %c0_i32 = arith.constant 0 : i32
    %c0_i32_0 = arith.constant 0 : i32
    return %c0_i32, %arg1 : i32, i32
  }
  func.func @transform_1(%arg0: i32, %arg1: i32) -> (i32, i32) {
    %c0_i32 = arith.constant 0 : i32
    return %arg0, %arg1 : i32, i32
  }
  func.func @transform_2(%arg0: i32, %arg1: i32) -> (i32, i32) {
    %c0_i32 = arith.constant 0 : i32
    return %arg0, %arg1 : i32, i32
  }
}

</mosaic_0001>

<bundles_post_ra>
// kernel: tpu_custom_call.1
= control target key start
LH: loop header
LB: loop body
LE: loop exit
PB: predicated region body
PF: predicated region fallthrough
CT: control target
= control target key end

     0   :  { %7 = vsyncpa [#allocation3], 0  ;;  %s174_s0 = inlined_call_operand.hbm [shape: f32[1,128], index: 0, kind: input, shape index: {}]   ;;  %s175_s1 = inlined_call_operand.hbm [shape: f32[8,128], index: 1, kind: input, shape index: {}]   ;;  %s176_s2 = inlined_call_operand.hbm [shape: f32[8,128], index: 2, kind: output, shape index: {}]  }
   0x1   :  { %8 = vsyncpa [#allocation6], 0 }
   0x2   :  { %9 = vsyncpa [#allocation4], 0  ;;  %s15_s11 = sshll.u32 %s174_s0, 4  ;;  %s147_s12 = smov [#allocation2]   ;;  %s16_s11 = int_to_ptr.hbm [resolvable:$true] %s15_s11 }
   0x3   :  { %s17_s13 = sshll.u32 %s147_s12, 4  ;;  %s26_s16 = sshll.u32 %s175_s1, 4  ;;  %s18_s13 = int_to_ptr.vmem [resolvable:$true] %s17_s13  ;;  %s27_s16 = int_to_ptr.hbm [resolvable:$true] %s26_s16 }
   0x4   :  { %20 = dma.hbm_to_vmem [thread:$0]  %s16_s11, 16, %s18_s13, [#allocation3]  }
   0x5   :  { %s148_s17 = smov [#allocation5]  }
   0x6   :  { %s28_s18 = sshll.u32 %s148_s17, 4  ;;  %s29_s18 = int_to_ptr.vmem [resolvable:$true] %s28_s18 }
   0x7   :  { %31 = dma.hbm_to_vmem [thread:$0]  %s27_s16, 128, %s29_s18, [#allocation6]  }
   0x8   :  { %141 = dma.done.wait [#allocation3], 16  }
   0x9   :  { %142 = vsyncadd [#allocation3], 4294967280 }
   0xa   :  { %143 = dma.done.wait [#allocation6], 128  }
   0xb   :  { %144 = vsyncadd [#allocation6], 4294967168  ;;  %s149_s19 = smov [#allocation7]   ;;  %s54_s22 = sshll.u32 %s176_s2, 4  ;;  %v40_v0 = vld [vmem:[#allocation5] sm:$0xff]  ;;  %s55_s22 = int_to_ptr.hbm [resolvable:$true] %s54_s22 }
   0xc   :  { %s52_s0 = sshll.u32 %s149_s19, 4  ;;  %v68_v1 = vld [vmem:[#allocation2] ss:$0 sm:$0xff]  ;;  %s53_s0 = int_to_ptr.vmem [resolvable:$true] %s52_s0 }
   0xd   :  { %v45_v2 = vmul.f32 %v68_v1, %v40_v0 }
   0xf   :  { %46 = vst [vmem:[#allocation7] sm:$0xff] %v45_v2 }
  0x10   :  { %57 = dma.vmem_to_hbm [thread:$0]  %s53_s0, 128, %s55_s22, [#allocation4]  }
  0x11   :  { %145 = dma.done.wait [#allocation4], 128  }
  0x12   :  { %146 = vsyncadd [#allocation4], 4294967168 }
  0x13   :  { %62 = vsyncpa [#allocation3], 1 }
  0x14   :  { %63 = vsyncpa [#allocation6], 1 }
  0x15   :  { %64 = vsyncpa [#allocation4], 1 }

</bundles_post_ra>
